<compile_context>
chip_gen: v7x
topology: tpu7x:2x2x1
jax: 0.10.0
libtpu: 0.0.40
codegen_flags: <defaults>
</compile_context>

<pallas_src>
import jax
import jax.numpy as jnp
from jax import lax
from jax.experimental import pallas as pl
from jax.experimental.pallas import tpu as pltpu


def _round_up(n: int, m: int) -> int:
    return ((n + m - 1) // m) * m


def txtnet_rs_kernel(x_ref, w_ref, b_ref, o_ref):
    # x_ref : (TB, Fp)  f32 VMEM  (zero-padded feature columns)
    # w_ref : (Cp, Fp)  f32 VMEM  (PyTorch Linear weight, zero-padded, untransposed)
    # b_ref : (1,  Cp)  f32 VMEM
    # o_ref : (TB, Cp)  f32 VMEM
    x = x_ref[...]

    # MXU matmul first: hid_raw = x @ W.T (contract feature axes of both).
    hid = lax.dot_general(
        x, w_ref[...],
        dimension_numbers=(((1,), (1,)), ((), ())),
        preferred_element_type=jnp.float32)                  # (TB, Cp)

    # Row L2 norm folded into a post-matmul scale.
    # PyTorch F.normalize: x / max(||x||, 1e-12)  ==  x * rsqrt(max(||x||^2, 1e-24))
    sq_sum = jnp.sum(x * x, axis=1, keepdims=True)            # (TB, 1)
    inv_norm = lax.rsqrt(jnp.maximum(sq_sum, 1e-24))          # (TB, 1) on EUP

    # alpha = 1.0
    o_ref[...] = jnp.tanh(hid * inv_norm + b_ref[...])


def txtnet_rs_forward(x, weight, bias, *, batch_tile=256):
    """x: (B, txt_feat_len); weight: (code_len, txt_feat_len); bias: (code_len,)."""
    B, F = x.shape
    C = weight.shape[0]

    Fp = _round_up(F, 128)                 # lane-dense features
    Cp = _round_up(C, 128)                 # lane-dense output codes
    TB = min(batch_tile, _round_up(B, 8))  # batch tile (multiple of 8 sublanes)
    Bp = _round_up(B, TB)

    # Zero-pad inputs/params. (In production, pad the parameters once at load
    # time instead of per call; done here inline to keep the script self-contained.)
    xp = jnp.zeros((Bp, Fp), jnp.float32).at[:B, :F].set(x.astype(jnp.float32))
    wp = jnp.zeros((Cp, Fp), jnp.float32).at[:C, :F].set(weight.astype(jnp.float32))
    bp = jnp.zeros((1, Cp), jnp.float32).at[0, :C].set(bias.astype(jnp.float32))

    out_padded = pl.pallas_call(
        txtnet_rs_kernel,
        out_shape=jax.ShapeDtypeStruct((Bp, Cp), jnp.float32),
        grid=(Bp // TB,),
        in_specs=[
            pl.BlockSpec((TB, Fp), lambda i: (i, 0)),   # x: tiled along batch
            pl.BlockSpec((Cp, Fp), lambda i: (0, 0)),   # weight: resident
            pl.BlockSpec((1, Cp), lambda i: (0, 0)),    # bias: resident
        ],
        out_specs=pl.BlockSpec((TB, Cp), lambda i: (i, 0)),
        compiler_params=pltpu.CompilerParams(
            dimension_semantics=("parallel",),          # megacore-shardable batch
            vmem_limit_bytes=32 * 1024 * 1024,          # safe on v5e/v6e/v7x
        ),
    )(xp, wp, bp)

    return out_padded[:B, :C]


if __name__ == "__main__":
    # Small shapes consistent with the module:
    #   batch = 8, txt_feat_len = 32, code_len = 16 (hidden_len unused in fwd)
    B, TXT_FEAT_LEN, CODE_LEN = 8, 32, 16

    key = jax.random.PRNGKey(0)
    kx, kw, kb = jax.random.split(key, 3)

    x = jax.random.normal(kx, (B, TXT_FEAT_LEN), dtype=jnp.float32)

    # Deterministic parameter init mimicking nn.Linear defaults
    # (uniform in [-1/sqrt(fan_in), 1/sqrt(fan_in)]).
    bound = 1.0 / jnp.sqrt(jnp.float32(TXT_FEAT_LEN))
    weight = jax.random.uniform(kw, (CODE_LEN, TXT_FEAT_LEN),
                                minval=-bound, maxval=bound, dtype=jnp.float32)
    bias = jax.random.uniform(kb, (CODE_LEN,),
                              minval=-bound, maxval=bound, dtype=jnp.float32)

    out = txtnet_rs_forward(x, weight, bias)
    out = jax.block_until_ready(out)

    # Pure-JAX reference check (same semantics as the PyTorch forward).
    xn_ref = x / jnp.maximum(jnp.linalg.norm(x, axis=1, keepdims=True), 1e-12)
    ref = jnp.tanh(xn_ref @ weight.T + bias)
    assert out.shape == (B, CODE_LEN)
    assert jnp.allclose(out, ref, atol=1e-5, rtol=1e-5)

    print("KERNEL_OK")
</pallas_src>

<mosaic_0001>
module attributes {stable_mosaic.version = 11 : i64} {
  func.func @txtnet_rs_kernel(%arg0: i32, %arg1: memref<8x128xf32, #tpu.memory_space<vmem>>, %arg2: memref<128x128xf32, #tpu.memory_space<vmem>>, %arg3: memref<1x128xf32, #tpu.memory_space<vmem>>, %arg4: memref<8x128xf32, #tpu.memory_space<vmem>>) attributes {dimension_semantics = [#tpu.dimension_semantics<parallel>], iteration_bounds = array<i64: 1>, scalar_prefetch = 0 : i64, scratch_operands = 0 : i64, tpu.core_type = #tpu.core_type<tc>, window_params = [{transform_indices = @transform_0, window_bounds = array<i64: 8, 128>}, {pipeline_mode = #tpu.pipeline_mode<synchronous>, transform_indices = @transform_1, window_bounds = array<i64: 128, 128>}, {pipeline_mode = #tpu.pipeline_mode<synchronous>, transform_indices = @transform_2, window_bounds = array<i64: 1, 128>}, {transform_indices = @transform_3, window_bounds = array<i64: 8, 128>}]} {
    %c0 = arith.constant 0 : index
    %c0_0 = arith.constant 0 : index
    %0 = vector.load %arg1[%c0, %c0_0] : memref<8x128xf32, #tpu.memory_space<vmem>>, vector<8x128xf32>
    %c0_1 = arith.constant 0 : index
    %c0_2 = arith.constant 0 : index
    %1 = vector.load %arg2[%c0_1, %c0_2] : memref<128x128xf32, #tpu.memory_space<vmem>>, vector<128x128xf32>
    %cst = arith.constant dense<0.000000e+00> : vector<8x128xf32>
    %2 = tpu.matmul %0, %1, %cst {dimension_numbers = #tpu.dot_dimension_numbers<[1], [1], [0], [0], [0, 0, 1, 0], [], []>} : vector<8x128xf32>, vector<128x128xf32>, vector<8x128xf32> -> vector<8x128xf32>
    %3 = arith.mulf %0, %0 : vector<8x128xf32>
    %cst_3 = arith.constant dense<0.000000e+00> : vector<8xf32>
    %4 = vector.multi_reduction <add>, %3, %cst_3 [1] : vector<8x128xf32> to vector<8xf32>
    %5 = vector.shape_cast %4 : vector<8xf32> to vector<8x1xf32>
    %cst_4 = arith.constant 1.000000e-24 : f32
    %6 = vector.broadcast %cst_4 : f32 to vector<8x1xf32>
    %7 = arith.maximumf %5, %6 : vector<8x1xf32>
    %8 = math.rsqrt %7 : vector<8x1xf32>
    %9 = vector.broadcast %8 : vector<8x1xf32> to vector<8x128xf32>
    %10 = arith.mulf %2, %9 : vector<8x128xf32>
    %c0_5 = arith.constant 0 : index
    %c0_6 = arith.constant 0 : index
    %11 = vector.load %arg3[%c0_5, %c0_6] : memref<1x128xf32, #tpu.memory_space<vmem>>, vector<1x128xf32>
    %12 = vector.broadcast %11 : vector<1x128xf32> to vector<8x128xf32>
    %13 = arith.addf %10, %12 : vector<8x128xf32>
    %14 = math.tanh %13 : vector<8x128xf32>
    %c0_7 = arith.constant 0 : index
    %c0_8 = arith.constant 0 : index
    %15 = vector.load %arg4[%c0_7, %c0_8] : memref<8x128xf32, #tpu.memory_space<vmem>>, vector<8x128xf32>
    tpu.vector_store %arg4[%c0_7, %c0_8], %14 {strides = array<i32>} : memref<8x128xf32, #tpu.memory_space<vmem>>, vector<8x128xf32>,
    return
  }
  func.func @transform_0(%arg0: i32) -> (i32, i32) {
    %c0_i32 = arith.constant 0 : i32
    %c0_i32_0 = arith.constant 0 : i32
    return %arg0, %c0_i32 : i32, i32
  }
  func.func @transform_1(%arg0: i32) -> (i32, i32) {
    %c0_i32 = arith.constant 0 : i32
    %c0_i32_0 = arith.constant 0 : i32
    %c0_i32_1 = arith.constant 0 : i32
    return %c0_i32, %c0_i32_0 : i32, i32
  }
  func.func @transform_2(%arg0: i32) -> (i32, i32) {
    %c0_i32 = arith.constant 0 : i32
    %c0_i32_0 = arith.constant 0 : i32
    %c0_i32_1 = arith.constant 0 : i32
    return %c0_i32, %c0_i32_0 : i32, i32
  }
  func.func @transform_3(%arg0: i32) -> (i32, i32) {
    %c0_i32 = arith.constant 0 : i32
    %c0_i32_0 = arith.constant 0 : i32
    return %arg0, %c0_i32 : i32, i32
  }
}

</mosaic_0001>

<bundles_post_ra>
// kernel: tpu_custom_call.1
= control target key start
LH: loop header
LB: loop body
LE: loop exit
PB: predicated region body
PF: predicated region fallthrough
CT: control target
= control target key end

     0   :  { %8 = vsyncpa [#allocation3], 0  ;;  %s395_s0 = inlined_call_operand.hbm [shape: f32[8,128], index: 0, kind: input, shape index: {}]   ;;  %s396_s1 = inlined_call_operand.hbm [shape: f32[128,128], index: 1, kind: input, shape index: {}]   ;;  %s397_s2 = inlined_call_operand.vmem [shape: f32[1,128], index: 2, kind: input, shape index: {}]   ;;  %s398_s3 = inlined_call_operand.hbm [shape: f32[8,128], index: 3, kind: output, shape index: {}]  }
   0x1   :  { %9 = vsyncpa [#allocation6], 0 }
   0x2   :  { %10 = vsyncpa [#allocation4], 0  ;;  %s321_s12 = smov [#allocation2]   ;;  %s322_s14 = smov [#allocation5]  }
   0x3   :  { %s17_s13 = sshll.u32 %s321_s12, 4  ;;  %s26_s15 = sshll.u32 %s322_s14, 4  ;;  %s18_s13 = int_to_ptr.vmem [resolvable:$true] %s17_s13  ;;  %s349_s15 = int_to_ptr.vmem [resolvable:$true] %s26_s15 }
   0x4   :  { %s249_s18 = scalar_lea.hbm %s395_s0, 128 }
   0x5   :  { %p250_p0 = scmp.ne.s32.totalorder %s395_s0, %s249_s18  ;;  %p253_p1 = scmp.lt.u32.totalorder %s249_s18, %s395_s0 }
   0x7   :  { %p255_p2 = pnand %p253_p1, %p250_p0 }
   0x9   :  { %258 = shalt.err (!%p255_p2)
}
   0xa   :  { %s259_s23 = scalar_lea.vmem %s18_s13, 128  ;;  %p264_p4 = scmp.lt.s32.totalorder %s18_s13, %s18_s13 }
   0xb   :  { %p260_p3 = scmp.ne.s32.totalorder %s18_s13, %s259_s23  ;;  %p265_p5 = scmp.lt.s32.totalorder %s259_s23, %s259_s23 }
   0xd   :  { %p266_p6 = por %p265_p5, %p264_p4 }
   0xf   :  { %p267_p7 = pnand %p266_p6, %p260_p3 }
  0x11   :  { %270 = shalt.err (!%p267_p7)
}
  0x12   :  { %20 = dma.hbm_to_vmem [thread:$0]  %s395_s0, 128, %s18_s13, [#allocation3]  }
  0x13   :  { %s271_s28 = scalar_lea.hbm %s396_s1, 2048 }
  0x14   :  { %p272_p8 = scmp.ne.s32.totalorder %s396_s1, %s271_s28  ;;  %p275_p9 = scmp.lt.u32.totalorder %s271_s28, %s396_s1 }
  0x16   :  { %p277_p10 = pnand %p275_p9, %p272_p8 }
  0x18   :  { %280 = shalt.err (!%p277_p10)
}
  0x19   :  { %s281_s6 = scalar_lea.vmem %s349_s15, 2048  ;;  %p286_p12 = scmp.lt.s32.totalorder %s349_s15, %s349_s15 }
  0x1a   :  { %p282_p11 = scmp.ne.s32.totalorder %s349_s15, %s281_s6  ;;  %p287_p13 = scmp.lt.s32.totalorder %s281_s6, %s281_s6 }
  0x1c   :  { %p288_p0 = por %p287_p13, %p286_p12 }
  0x1e   :  { %p289_p1 = pnand %p288_p0, %p282_p11 }
  0x20   :  { %292 = shalt.err (!%p289_p1)
}
  0x21   :  { %s323_s0 = smov 128   ;;  %s324_s7 = smov 8  }
  0x22   :  { %32 = dma.hbm_to_vmem [thread:$0]  %s396_s1, 2048, %s349_s15, [#allocation6], %s323_s0, %s323_s0, %s324_s7  }
  0x23   :  { %315 = dma.done.wait [#allocation3], 128  }
  0x24   :  { %316 = vsyncadd [#allocation3], 4294967168 }
  0x25   :  { %317 = dma.done.wait [#allocation6], 2048  }
  0x26   :  { %318 = vsyncadd [#allocation6], 4294965248  ;;  %v325_v0 = vmov 0.0|0.0   ;;  %vm326_vm0 = vmmov 0   ;;  %v327_v1 = vmov 0.0   ;;  %v42_v2 = vld [vmem:[#allocation5] sm:$0xff] }
  0x27   :  { %213 = vmatprep.subr.bf16.mxu0 %v325_v0  ;;  %210 = vmatprep.mubr.msk.f32.mxu0 %vm326_vm0, %v327_v1  ;;  %v43_v3 = vld [vmem:[#allocation5 + $0x8] sm:$0xff]  ;;  %v44_v5 = vld [vmem:[#allocation5 + $0x10] sm:$0xff]  ;;  %v45_v6 = vld [vmem:[#allocation5 + $0x18] sm:$0xff]  ;;  %s328_s11 = smov [#allocation7]  }
  0x28   :  { %v214_v4 = vpack.c.bf16 %v43_v3, %v42_v2  ;;  %v41_v7 = vld [vmem:[#allocation2] sm:$0xff]  ;;  %v217_v9 = vpack.c.bf16 %v45_v6, %v44_v5  ;;  %v46_v10 = vld [vmem:[#allocation5 + $0x20] sm:$0xff]  ;;  %v47_v11 = vld [vmem:[#allocation5 + $0x28] sm:$0xff]  ;;  %s150_s12 = sshll.u32 %s328_s11, 4  ;;  %s151_s12 = int_to_ptr.vmem [resolvable:$true] %s150_s12 }
  0x29   :  { %v128_v8 = vmul.f32 %v41_v7, %v41_v7  ;;  %v220_v12 = vpack.c.bf16 %v47_v11, %v46_v10  ;;  %v48_v13 = vld [vmem:[#allocation5 + $0x30] sm:$0xff]  ;;  %v49_v14 = vld [vmem:[#allocation5 + $0x38] sm:$0xff]  ;;  %v50_v16 = vld [vmem:[#allocation5 + $0x40] sm:$0xff]  ;;  %s293_s13 = scalar_lea.vmem %s151_s12, 128  ;;  %p298_p3 = scmp.lt.s32.totalorder %s151_s12, %s151_s12 }
  0x2a   :  { %215 = vmatpush3.bf16.xpose.msra.mxu0 %v214_v4  ;;  %v223_v15 = vpack.c.bf16 %v49_v14, %v48_v13  ;;  %v51_v17 = vld [vmem:[#allocation5 + $0x48] sm:$0xff]  ;;  %v52_v19 = vld [vmem:[#allocation5 + $0x50] sm:$0xff]  ;;  %v53_v20 = vld [vmem:[#allocation5 + $0x58] sm:$0xff]  ;;  %p294_p2 = scmp.ne.s32.totalorder %s151_s12, %s293_s13  ;;  %p299_p4 = scmp.lt.s32.totalorder %s293_s13, %s293_s13 }
  0x2b   :  { %216 = vmatprep.subr.bf16.mxu0 %v325_v0  ;;  %129 = vadd.xlane.f32.xlu0 %v128_v8  ;;  %v226_v18 = vpack.c.bf16 %v51_v17, %v50_v16  ;;  %v229_v21 = vpack.c.bf16 %v53_v20, %v52_v19  ;;  %v54_v22 = vld [vmem:[#allocation5 + $0x60] sm:$0xff]  ;;  %v55_v23 = vld [vmem:[#allocation5 + $0x68] sm:$0xff]  ;;  %v56_v25 = vld [vmem:[#allocation5 + $0x70] sm:$0xff] }
  0x2c   :  { %v232_v24 = vpack.c.bf16 %v55_v23, %v54_v22  ;;  %v57_v26 = vld [vmem:[#allocation5 + $0x78] sm:$0xff]  ;;  %p300_p5 = por %p299_p4, %p298_p3 }
  0x2d   :  { %v235_v27 = vpack.c.bf16 %v57_v26, %v56_v25  ;;  %v160_v32 = vld [vmem:[%s397_s2] ss:$0 sm:$0xff] }
  0x2e   :  { %p301_p6 = pnand %p300_p5, %p294_p2 }
  0x32   :  { %218 = vmatpush3.bf16.xpose.msra.mxu0 %v217_v9 }
  0x33   :  { %219 = vmatprep.subr.bf16.mxu0 %v325_v0 }
  0x3a   :  { %221 = vmatpush3.bf16.xpose.msra.mxu0 %v220_v12 }
  0x3b   :  { %222 = vmatprep.subr.bf16.mxu0 %v325_v0 }
  0x42   :  { %224 = vmatpush3.bf16.xpose.msra.mxu0 %v223_v15 }
  0x43   :  { %225 = vmatprep.subr.bf16.mxu0 %v325_v0 }
  0x4a   :  { %227 = vmatpush3.bf16.xpose.msra.mxu0 %v226_v18 }
  0x4b   :  { %228 = vmatprep.subr.bf16.mxu0 %v325_v0 }
  0x52   :  { %230 = vmatpush3.bf16.xpose.msra.mxu0 %v229_v21 }
  0x53   :  { %231 = vmatprep.subr.bf16.mxu0 %v325_v0 }
  0x5a   :  { %233 = vmatpush3.bf16.xpose.msra.mxu0 %v232_v24 }
  0x5b   :  { %234 = vmatprep.subr.bf16.mxu0 %v325_v0 }
  0x62   :  { %236 = vmatpush3.bf16.xpose.msra.mxu0 %v235_v27 }
  0x69   :  { %211 = vmatmul.mubr.f32.vlgmr.msra.gmra.mrb[0].mxu0 %v41_v7 }
  0xb8   :  { %v130_v28 = vpop.xlane.xlu0 %129 }
  0xb9   :  { %v131_v29 = vmax.f32 %v130_v28, 1e-24 }
  0xbb   :  { %245 = vrsqrt.f32 %v131_v29 }
  0xc5   :  { %v246_v30 = vpop.eup %245 }
 0x13c   :  { %v124_v31 = vpop.f32.mrb[0].mxu0 }
 0x13d   :  { %v133_v33 = vmul.f32 %v246_v30, %v124_v31  ;;  %v212_v34 = vpop.f32.mrb[1].mxu0 }
 0x13f   :  { %v141_v35 = vadd.f32 %v160_v32, %v133_v33 }
 0x141   :  { %247 = vtanh.f32 %v141_v35 }
 0x14b   :  { %v248_v36 = vpop.eup %247 }
 0x14c   :  { %143 = vst [vmem:[#allocation7] sm:$0xff] %v248_v36 }
 0x14d   :  { %304 = shalt.err (!%p301_p6)
}
 0x14e   :  { %s305_s2 = scalar_lea.hbm %s398_s3, 128 }
 0x14f   :  { %p306_p7 = scmp.ne.s32.totalorder %s398_s3, %s305_s2  ;;  %p309_p8 = scmp.lt.u32.totalorder %s305_s2, %s398_s3 }
 0x151   :  { %p311_p9 = pnand %p309_p8, %p306_p7 }
 0x153   :  { %314 = shalt.err (!%p311_p9)
}
 0x154   :  { %153 = dma.vmem_to_hbm [thread:$0]  %s151_s12, 128, %s398_s3, [#allocation4]  }
 0x155   :  { %319 = dma.done.wait [#allocation4], 128  }
 0x156   :  { %320 = vsyncadd [#allocation4], 4294967168 }
 0x157   :  { %157 = vsyncpa [#allocation3], 1 }
 0x158   :  { %158 = vsyncpa [#allocation6], 1 }
 0x159   :  { %159 = vsyncpa [#allocation4], 1 }

</bundles_post_ra>
